<compile_context>
chip_gen: v7x
topology: tpu7x:2x2x1
jax: 0.10.0
libtpu: 0.0.40
codegen_flags: <defaults>
</compile_context>

<pallas_src>
import functools

import jax
import jax.numpy as jnp
from jax.experimental import pallas as pl
from jax.experimental.pallas import tpu as pltpu

_LANE = 128           # pad feature axes to multiples of the 128-lane width
_SUBLANE_ALIGN = 32   # batch-tile alignment safe for fp32 / bf16 packing


def _round_up(x, m):
    return ((x + m - 1) // m) * m


def _mlp_kernel(x_ref,
                w1_ref, b1_ref,
                w2_ref, b2_ref,
                w3_ref, b3_ref,
                w4_ref, b4_ref,
                wv_ref, bv_ref,
                out_ref, *, compute_dtype):
    """Fused 5-layer MLP: 4x (Linear + ReLU) then a Linear (lane-padded out)."""

    def dense_relu(h, w_ref, b_ref):
        acc = jnp.dot(h.astype(compute_dtype), w_ref[...],
                      preferred_element_type=jnp.float32)
        return jnp.maximum(acc + b_ref[...], 0.0)

    h = x_ref[...]        # already in compute_dtype (cast once in the wrapper)
    h = dense_relu(h, w1_ref, b1_ref)
    h = dense_relu(h, w2_ref, b2_ref)
    h = dense_relu(h, w3_ref, b3_ref)
    h = dense_relu(h, w4_ref, b4_ref)
    # Final V layer kept in fp32; its weight/bias are lane-padded to 128
    # columns (real value in column 0) so the store is a full 128-lane vst.
    v = jnp.dot(h, wv_ref[...], preferred_element_type=jnp.float32) + bv_ref[...]
    out_ref[...] = v.astype(out_ref.dtype)


def value_function_forward(state, weights, biases, *, block_b=512,
                           compute_dtype=jnp.bfloat16):
    """Run the fused ValueFunction MLP as a single Pallas kernel.

    state  : [B, D_in] float32
    weights: list of 5 arrays, each [in_i, out_i]   (y = x @ W + b layout)
    biases : list of 5 arrays, each [1, out_i] (or [out_i])
    returns: [B, 1] float32
    """
    assert len(weights) == 5 and len(biases) == 5
    B, d_in = state.shape
    assert weights[0].shape[0] == d_in

    # ---- batch tiling: large tiles, cdiv + padding for ragged batches -------
    block_b = max(int(block_b), _SUBLANE_ALIGN)
    if B >= 2 * _SUBLANE_ALIGN:
        # Keep at least 2 parallel grid steps so v7x's second TensorCore
        # is not idle, while keeping tiles large to amortize per-step overhead.
        block_b = min(block_b, _round_up(pl.cdiv(B, 2), _SUBLANE_ALIGN))
    block_b = min(block_b, _round_up(B, _SUBLANE_ALIGN))
    block_b = _round_up(block_b, _SUBLANE_ALIGN)

    num_blocks = pl.cdiv(B, block_b)
    b_pad = num_blocks * block_b

    state_p = state
    if b_pad != B:
        state_p = jnp.pad(state, ((0, b_pad - B), (0, 0)))
    state_p = state_p.astype(compute_dtype)

    # ---- parameter padding: lane-dense hidden widths & output ---------------
    in_dims = [w.shape[0] for w in weights]
    out_dims = [w.shape[1] for w in weights]
    pad_in = [in_dims[0]] + [_round_up(d, _LANE) for d in in_dims[1:]]
    pad_out = [_round_up(d, _LANE) for d in out_dims]

    def pad2d(arr, rows, cols):
        return jnp.pad(arr, ((0, rows - arr.shape[0]), (0, cols - arr.shape[1])))

    padded_params = []
    for li, (w, b) in enumerate(zip(weights, biases)):
        w_dtype = compute_dtype if li < 4 else jnp.float32   # final V layer fp32
        padded_params.append(pad2d(w, pad_in[li], pad_out[li]).astype(w_dtype))
        padded_params.append(
            pad2d(b.reshape(1, -1), 1, pad_out[li]).astype(jnp.float32))

    # ---- specs ---------------------------------------------------------------
    def param_spec(arr):
        shp = arr.shape
        # Grid-invariant block: the pipeline keeps it resident across steps.
        return pl.BlockSpec(shp, lambda i: (0,) * len(shp))

    in_specs = [pl.BlockSpec((block_b, d_in), lambda i: (i, 0))]
    in_specs += [param_spec(p) for p in padded_params]

    out_lanes = pad_out[-1]
    out_spec = pl.BlockSpec((block_b, out_lanes), lambda i: (i, 0))

    out_padded = pl.pallas_call(
        functools.partial(_mlp_kernel, compute_dtype=compute_dtype),
        out_shape=jax.ShapeDtypeStruct((b_pad, out_lanes), jnp.float32),
        grid_spec=pltpu.PrefetchScalarGridSpec(
            num_scalar_prefetch=0,
            grid=(num_blocks,),
            in_specs=in_specs,
            out_specs=out_spec,
        ),
        compiler_params=pltpu.CompilerParams(
            dimension_semantics=("parallel",)),
    )(state_p, *padded_params)

    # Slice off the padded batch rows and the padded output lanes.
    return out_padded[:B, :out_dims[-1]]


def xavier_uniform(key, fan_in, fan_out, dtype=jnp.float32):
    """Matches nn.init.xavier_uniform_ (gain=1). Stored as [in, out]."""
    bound = jnp.sqrt(6.0 / (fan_in + fan_out))
    return jax.random.uniform(key, (fan_in, fan_out), dtype,
                              minval=-bound, maxval=bound)


def linear_bias_default(key, fan_in, fan_out, dtype=jnp.float32):
    """Matches PyTorch nn.Linear default bias init: U(-1/sqrt(fan_in), ...)."""
    bound = 1.0 / jnp.sqrt(jnp.array(fan_in, dtype))
    return jax.random.uniform(key, (1, fan_out), dtype,
                              minval=-bound, maxval=bound)


if __name__ == "__main__":
    # Sizes consistent with the module's params dict:
    #   params = {'l1': (32, 64), 'l2': (64, 64), 'l3': (64, 64),
    #             'l4': (64, 32), 'l5': (32, 1)}
    params = {
        "l1": (32, 64),
        "l2": (64, 64),
        "l3": (64, 64),
        "l4": (64, 32),
        "l5": (32, 1),
    }
    batch = 200   # deliberately NOT a multiple of the batch tile (tests cdiv+pad)

    key = jax.random.PRNGKey(0)
    keys = jax.random.split(key, 11)

    state = jax.random.normal(keys[0], (batch, params["l1"][0]), jnp.float32)

    layer_dims = [params[k] for k in ("l1", "l2", "l3", "l4", "l5")]
    weights, biases = [], []
    for li, (fi, fo) in enumerate(layer_dims):
        weights.append(xavier_uniform(keys[1 + 2 * li], fi, fo))
        biases.append(linear_bias_default(keys[2 + 2 * li], fi, fo))

    # Pallas kernel result.
    v_kernel = value_function_forward(state, weights, biases)
    v_kernel = jax.block_until_ready(v_kernel)
    assert v_kernel.shape == (batch, 1)

    # Pure-JAX reference with the same mixed precision (bf16 matmul inputs,
    # fp32 accumulation, final V layer fp32).
    def ref_forward(x):
        h = x
        for w, b in zip(weights[:-1], biases[:-1]):
            acc = jnp.dot(h.astype(jnp.bfloat16), w.astype(jnp.bfloat16),
                          preferred_element_type=jnp.float32)
            h = jnp.maximum(acc + b, 0.0)
        return jnp.dot(h, weights[-1], preferred_element_type=jnp.float32) + biases[-1]

    v_ref = ref_forward(state)
    max_err = jnp.max(jnp.abs(v_kernel - v_ref))
    assert jnp.allclose(v_kernel, v_ref, atol=2e-3, rtol=2e-3), (
        f"mismatch: max abs err {max_err}")

    print("KERNEL_OK")
</pallas_src>

<mosaic_0001>
module attributes {stable_mosaic.version = 11 : i64} {
  func.func @_mlp_kernel(%arg0: i32, %arg1: memref<128x32xbf16, #tpu.memory_space<vmem>>, %arg2: memref<32x128xbf16, #tpu.memory_space<vmem>>, %arg3: memref<1x128xf32, #tpu.memory_space<vmem>>, %arg4: memref<128x128xbf16, #tpu.memory_space<vmem>>, %arg5: memref<1x128xf32, #tpu.memory_space<vmem>>, %arg6: memref<128x128xbf16, #tpu.memory_space<vmem>>, %arg7: memref<1x128xf32, #tpu.memory_space<vmem>>, %arg8: memref<128x128xbf16, #tpu.memory_space<vmem>>, %arg9: memref<1x128xf32, #tpu.memory_space<vmem>>, %arg10: memref<128x128xf32, #tpu.memory_space<vmem>>, %arg11: memref<1x128xf32, #tpu.memory_space<vmem>>, %arg12: memref<128x128xf32, #tpu.memory_space<vmem>>) attributes {dimension_semantics = [#tpu.dimension_semantics<parallel>], iteration_bounds = array<i64: 2>, scalar_prefetch = 0 : i64, scratch_operands = 0 : i64, tpu.core_type = #tpu.core_type<tc>, window_params = [{transform_indices = @transform_0, window_bounds = array<i64: 128, 32>}, {pipeline_mode = #tpu.pipeline_mode<synchronous>, transform_indices = @transform_1, window_bounds = array<i64: 32, 128>}, {pipeline_mode = #tpu.pipeline_mode<synchronous>, transform_indices = @transform_2, window_bounds = array<i64: 1, 128>}, {pipeline_mode = #tpu.pipeline_mode<synchronous>, transform_indices = @transform_3, window_bounds = array<i64: 128, 128>}, {pipeline_mode = #tpu.pipeline_mode<synchronous>, transform_indices = @transform_4, window_bounds = array<i64: 1, 128>}, {pipeline_mode = #tpu.pipeline_mode<synchronous>, transform_indices = @transform_5, window_bounds = array<i64: 128, 128>}, {pipeline_mode = #tpu.pipeline_mode<synchronous>, transform_indices = @transform_6, window_bounds = array<i64: 1, 128>}, {pipeline_mode = #tpu.pipeline_mode<synchronous>, transform_indices = @transform_7, window_bounds = array<i64: 128, 128>}, {pipeline_mode = #tpu.pipeline_mode<synchronous>, transform_indices = @transform_8, window_bounds = array<i64: 1, 128>}, {pipeline_mode = #tpu.pipeline_mode<synchronous>, transform_indices = @transform_9, window_bounds = array<i64: 128, 128>}, {pipeline_mode = #tpu.pipeline_mode<synchronous>, transform_indices = @transform_10, window_bounds = array<i64: 1, 128>}, {transform_indices = @transform_11, window_bounds = array<i64: 128, 128>}]} {
    %c0 = arith.constant 0 : index
    %c0_0 = arith.constant 0 : index
    %0 = vector.load %arg1[%c0, %c0_0] : memref<128x32xbf16, #tpu.memory_space<vmem>>, vector<128x32xbf16>
    %c0_1 = arith.constant 0 : index
    %c0_2 = arith.constant 0 : index
    %1 = vector.load %arg2[%c0_1, %c0_2] : memref<32x128xbf16, #tpu.memory_space<vmem>>, vector<32x128xbf16>
    %cst = arith.constant dense<0.000000e+00> : vector<128x128xf32>
    %2 = tpu.matmul %0, %1, %cst {dimension_numbers = #tpu.dot_dimension_numbers<[1], [0], [0], [1], [0, 0, 1, 1], [], []>} : vector<128x32xbf16>, vector<32x128xbf16>, vector<128x128xf32> -> vector<128x128xf32>
    %c0_3 = arith.constant 0 : index
    %c0_4 = arith.constant 0 : index
    %3 = vector.load %arg3[%c0_3, %c0_4] : memref<1x128xf32, #tpu.memory_space<vmem>>, vector<1x128xf32>
    %4 = vector.broadcast %3 : vector<1x128xf32> to vector<128x128xf32>
    %5 = arith.addf %2, %4 : vector<128x128xf32>
    %cst_5 = arith.constant 0.000000e+00 : f32
    %6 = vector.broadcast %cst_5 : f32 to vector<128x128xf32>
    %7 = arith.maximumf %5, %6 : vector<128x128xf32>
    %8 = arith.truncf %7 : vector<128x128xf32> to vector<128x128xbf16>
    %c0_6 = arith.constant 0 : index
    %c0_7 = arith.constant 0 : index
    %9 = vector.load %arg4[%c0_6, %c0_7] : memref<128x128xbf16, #tpu.memory_space<vmem>>, vector<128x128xbf16>
    %cst_8 = arith.constant dense<0.000000e+00> : vector<128x128xf32>
    %10 = tpu.matmul %8, %9, %cst_8 {dimension_numbers = #tpu.dot_dimension_numbers<[1], [0], [0], [1], [0, 0, 1, 1], [], []>} : vector<128x128xbf16>, vector<128x128xbf16>, vector<128x128xf32> -> vector<128x128xf32>
    %c0_9 = arith.constant 0 : index
    %c0_10 = arith.constant 0 : index
    %11 = vector.load %arg5[%c0_9, %c0_10] : memref<1x128xf32, #tpu.memory_space<vmem>>, vector<1x128xf32>
    %12 = vector.broadcast %11 : vector<1x128xf32> to vector<128x128xf32>
    %13 = arith.addf %10, %12 : vector<128x128xf32>
    %cst_11 = arith.constant 0.000000e+00 : f32
    %14 = vector.broadcast %cst_11 : f32 to vector<128x128xf32>
    %15 = arith.maximumf %13, %14 : vector<128x128xf32>
    %16 = arith.truncf %15 : vector<128x128xf32> to vector<128x128xbf16>
    %c0_12 = arith.constant 0 : index
    %c0_13 = arith.constant 0 : index
    %17 = vector.load %arg6[%c0_12, %c0_13] : memref<128x128xbf16, #tpu.memory_space<vmem>>, vector<128x128xbf16>
    %cst_14 = arith.constant dense<0.000000e+00> : vector<128x128xf32>
    %18 = tpu.matmul %16, %17, %cst_14 {dimension_numbers = #tpu.dot_dimension_numbers<[1], [0], [0], [1], [0, 0, 1, 1], [], []>} : vector<128x128xbf16>, vector<128x128xbf16>, vector<128x128xf32> -> vector<128x128xf32>
    %c0_15 = arith.constant 0 : index
    %c0_16 = arith.constant 0 : index
    %19 = vector.load %arg7[%c0_15, %c0_16] : memref<1x128xf32, #tpu.memory_space<vmem>>, vector<1x128xf32>
    %20 = vector.broadcast %19 : vector<1x128xf32> to vector<128x128xf32>
    %21 = arith.addf %18, %20 : vector<128x128xf32>
    %cst_17 = arith.constant 0.000000e+00 : f32
    %22 = vector.broadcast %cst_17 : f32 to vector<128x128xf32>
    %23 = arith.maximumf %21, %22 : vector<128x128xf32>
    %24 = arith.truncf %23 : vector<128x128xf32> to vector<128x128xbf16>
    %c0_18 = arith.constant 0 : index
    %c0_19 = arith.constant 0 : index
    %25 = vector.load %arg8[%c0_18, %c0_19] : memref<128x128xbf16, #tpu.memory_space<vmem>>, vector<128x128xbf16>
    %cst_20 = arith.constant dense<0.000000e+00> : vector<128x128xf32>
    %26 = tpu.matmul %24, %25, %cst_20 {dimension_numbers = #tpu.dot_dimension_numbers<[1], [0], [0], [1], [0, 0, 1, 1], [], []>} : vector<128x128xbf16>, vector<128x128xbf16>, vector<128x128xf32> -> vector<128x128xf32>
    %c0_21 = arith.constant 0 : index
    %c0_22 = arith.constant 0 : index
    %27 = vector.load %arg9[%c0_21, %c0_22] : memref<1x128xf32, #tpu.memory_space<vmem>>, vector<1x128xf32>
    %28 = vector.broadcast %27 : vector<1x128xf32> to vector<128x128xf32>
    %29 = arith.addf %26, %28 : vector<128x128xf32>
    %cst_23 = arith.constant 0.000000e+00 : f32
    %30 = vector.broadcast %cst_23 : f32 to vector<128x128xf32>
    %31 = arith.maximumf %29, %30 : vector<128x128xf32>
    %c0_24 = arith.constant 0 : index
    %c0_25 = arith.constant 0 : index
    %32 = vector.load %arg10[%c0_24, %c0_25] : memref<128x128xf32, #tpu.memory_space<vmem>>, vector<128x128xf32>
    %cst_26 = arith.constant dense<0.000000e+00> : vector<128x128xf32>
    %33 = tpu.matmul %31, %32, %cst_26 {dimension_numbers = #tpu.dot_dimension_numbers<[1], [0], [0], [1], [0, 0, 1, 1], [], []>} : vector<128x128xf32>, vector<128x128xf32>, vector<128x128xf32> -> vector<128x128xf32>
    %c0_27 = arith.constant 0 : index
    %c0_28 = arith.constant 0 : index
    %34 = vector.load %arg11[%c0_27, %c0_28] : memref<1x128xf32, #tpu.memory_space<vmem>>, vector<1x128xf32>
    %35 = vector.broadcast %34 : vector<1x128xf32> to vector<128x128xf32>
    %36 = arith.addf %33, %35 : vector<128x128xf32>
    %c0_29 = arith.constant 0 : index
    %c0_30 = arith.constant 0 : index
    %37 = vector.load %arg12[%c0_29, %c0_30] : memref<128x128xf32, #tpu.memory_space<vmem>>, vector<128x128xf32>
    tpu.vector_store %arg12[%c0_29, %c0_30], %36 {strides = array<i32>} : memref<128x128xf32, #tpu.memory_space<vmem>>, vector<128x128xf32>,
    return
  }
  func.func @transform_0(%arg0: i32) -> (i32, i32) {
    %c0_i32 = arith.constant 0 : i32
    %c0_i32_0 = arith.constant 0 : i32
    return %arg0, %c0_i32 : i32, i32
  }
  func.func @transform_1(%arg0: i32) -> (i32, i32) {
    %c0_i32 = arith.constant 0 : i32
    %c0_i32_0 = arith.constant 0 : i32
    %c0_i32_1 = arith.constant 0 : i32
    return %c0_i32, %c0_i32_0 : i32, i32
  }
  func.func @transform_2(%arg0: i32) -> (i32, i32) {
    %c0_i32 = arith.constant 0 : i32
    %c0_i32_0 = arith.constant 0 : i32
    %c0_i32_1 = arith.constant 0 : i32
    return %c0_i32, %c0_i32_0 : i32, i32
  }
  func.func @transform_3(%arg0: i32) -> (i32, i32) {
    %c0_i32 = arith.constant 0 : i32
    %c0_i32_0 = arith.constant 0 : i32
    %c0_i32_1 = arith.constant 0 : i32
    return %c0_i32, %c0_i32_0 : i32, i32
  }
  func.func @transform_4(%arg0: i32) -> (i32, i32) {
    %c0_i32 = arith.constant 0 : i32
    %c0_i32_0 = arith.constant 0 : i32
    %c0_i32_1 = arith.constant 0 : i32
    return %c0_i32, %c0_i32_0 : i32, i32
  }
  func.func @transform_5(%arg0: i32) -> (i32, i32) {
    %c0_i32 = arith.constant 0 : i32
    %c0_i32_0 = arith.constant 0 : i32
    %c0_i32_1 = arith.constant 0 : i32
    return %c0_i32, %c0_i32_0 : i32, i32
  }
  func.func @transform_6(%arg0: i32) -> (i32, i32) {
    %c0_i32 = arith.constant 0 : i32
    %c0_i32_0 = arith.constant 0 : i32
    %c0_i32_1 = arith.constant 0 : i32
    return %c0_i32, %c0_i32_0 : i32, i32
  }
  func.func @transform_7(%arg0: i32) -> (i32, i32) {
    %c0_i32 = arith.constant 0 : i32
    %c0_i32_0 = arith.constant 0 : i32
    %c0_i32_1 = arith.constant 0 : i32
    return %c0_i32, %c0_i32_0 : i32, i32
  }
  func.func @transform_8(%arg0: i32) -> (i32, i32) {
    %c0_i32 = arith.constant 0 : i32
    %c0_i32_0 = arith.constant 0 : i32
    %c0_i32_1 = arith.constant 0 : i32
    return %c0_i32, %c0_i32_0 : i32, i32
  }
  func.func @transform_9(%arg0: i32) -> (i32, i32) {
    %c0_i32 = arith.constant 0 : i32
    %c0_i32_0 = arith.constant 0 : i32
    %c0_i32_1 = arith.constant 0 : i32
    return %c0_i32, %c0_i32_0 : i32, i32
  }
  func.func @transform_10(%arg0: i32) -> (i32, i32) {
    %c0_i32 = arith.constant 0 : i32
    %c0_i32_0 = arith.constant 0 : i32
    %c0_i32_1 = arith.constant 0 : i32
    return %c0_i32, %c0_i32_0 : i32, i32
  }
  func.func @transform_11(%arg0: i32) -> (i32, i32) {
    %c0_i32 = arith.constant 0 : i32
    %c0_i32_0 = arith.constant 0 : i32
    return %arg0, %c0_i32 : i32, i32
  }
}

</mosaic_0001>

<bundles_post_ra>
// kernel: tpu_custom_call.1
= control target key start
LH: loop header
LB: loop body
LE: loop exit
PB: predicated region body
PF: predicated region fallthrough
CT: control target
= control target key end

     0   :  { %s2782_s0 = inlined_call_operand.vmem [shape: bf16[256,32], index: 0, kind: input, shape index: {}]   ;;  %s2783_s1 = inlined_call_operand.hbm [shape: bf16[32,128], index: 1, kind: input, shape index: {}]   ;;  %s2784_s2 = inlined_call_operand.vmem [shape: f32[1,128], index: 2, kind: input, shape index: {}]   ;;  %s2785_s3 = inlined_call_operand.vmem [shape: bf16[128,128], index: 3, kind: input, shape index: {}]   ;;  %s2786_s4 = inlined_call_operand.vmem [shape: f32[1,128], index: 4, kind: input, shape index: {}]   ;;  %s2787_s5 = inlined_call_operand.hbm [shape: bf16[128,128], index: 5, kind: input, shape index: {}]   ;;  %s2788_s6 = inlined_call_operand.hbm [shape: f32[1,128], index: 6, kind: input, shape index: {}]   ;;  %s2789_s7 = inlined_call_operand.hbm [shape: bf16[128,128], index: 7, kind: input, shape index: {}]   ;;  %s2790_s8 = inlined_call_operand.hbm [shape: f32[1,128], index: 8, kind: input, shape index: {}]   ;;  %s2791_s9 = inlined_call_operand.vmem [shape: f32[128,128], index: 9, kind: input, shape index: {}]   ;;  %s2792_s10 = inlined_call_operand.vmem [shape: f32[1,128], index: 10, kind: input, shape index: {}]   ;;  %s2793_s11 = inlined_call_operand.hbm [shape: f32[256,128], index: 11, kind: output, shape index: {}]  }
   0x1   :  { %2804 = sst [smem:[#allocation22_spill]] %s2787_s5 }
   0x2   :  { %2805 = sst [smem:[#allocation23_spill]] %s2793_s11 }
   0x3   :  { %16 = vsyncpa [#allocation3], 0 }
   0x4   :  { %17 = vsyncpa [#allocation6], 0 }
   0x5   :  { %18 = vsyncpa [#allocation9], 0 }
   0x6   :  { %19 = vsyncpa [#allocation4], 0 }
   0x7   :  { %21 = vsyncpa [#allocation4 + $0x1], 0  ;;  %s2355_s17 = smov 0   ;;  %s2357_s18 = smov 0  }
   0x8   :  { %s2359_s19 = smov 0   ;;  %s2361_s20 = smov 0  }
   0x9 LB: > { %2806 = sst [smem:[#allocation16_spill]] %s2271_s17  ;;  %s2376_s21 = sadd.s32 4294967295, %s2283_s20   ;;  %s2283_s20 = sphi %s2361_s20, %s2831_s20   ;;  %s2279_s19 = sphi %s2359_s19, %s2833_s19   ;;  %s2275_s18 = sphi %s2357_s18, %s2835_s18   ;;  %s2271_s17 = sphi %s2355_s17, %s2834_s17  }
   0xa   : > { %2807 = sst [smem:[#allocation17_spill]] %s2279_s19  ;;  %s1561_s22 = sadd.s32 4294967294, %s2283_s20  }
   0xb   : > { %2808 = sst [smem:[#allocation18_spill]] %s2283_s20  ;;  %s2380_s23 = sadd.s32 1, %s2283_s20  }
   0xc   : > { %2809 = sst [smem:[#allocation19_spill]] %s2380_s23  ;;  %s270_s24 = sadd.s32 1, %s2279_s19 }
   0xd   : > { %s267_s25 = ssub.s32 %s2283_s20, %s2380_s23  ;;  %p280_p0 = scmp.ne.s32.totalorder %s2279_s19, %s2275_s18 }
   0xe   : > { %p268_p1 = scmp.eq.s32.totalorder %s267_s25, 0  ;;  %p281_p2 = scmp.eq.s32.totalorder %s2376_s21, 1 }
   0xf   : > { %p286_p3 = scmp.ne.s32.totalorder %s2275_s18, %s2271_s17  ;;  %p287_p4 = scmp.eq.s32.totalorder %s1561_s22, 1 }
  0x10   : > { %s2391_s26 = scalar_select %p268_p1, %s2279_s19, %s270_s24  }
  0x11   : > { %p2393_p5 = por %p281_p2, %p280_p0  ;;  %p2397_p6 = por %p287_p4, %p286_p3 }
  0x12   : > { %2810 = sst [smem:[#allocation20_spill]] %s2391_s26  ;;  %p1562_p7 = scmp.ge.s32.totalorder %s2283_s20, 1 }
  0x13   : > { %s2811_s27 = scalar_select %p2393_p5, 1, 0 }
  0x14   : > { %s2812_s28 = scalar_select %p2397_p6, 1, 0 }
  0x15   : > { %p294_p8 = scmp.lt.s32.totalorder %s2283_s20, 3  ;;  %p2797_p9 = scmp.eq.s32.totalorder %s2376_s21, 0 }
  0x16   : > { %2813 = sst [smem:[#allocation21_spill]] %s2812_s28  ;;  %s2285_s30 = smov [#allocation5]  }
  0x17   : > { %p2404_p10 = pnand %p1562_p7, %p294_p8  ;;  %s328_s12 = sshll.u32 %s2285_s30, 4  ;;  %s2410_s12 = int_to_ptr.vmem [resolvable:$true] %s328_s12 }
  0x18   : > { %s2286_s14 = smov [#allocation8]   ;;  %s2287_s16 = smov [#allocation2]  }
  0x19   : > { %s2814_s29 = scalar_select %p2404_p10, 1, 0 }
  0x1a   : > { %p1963_p11 = pneg %p2404_p10  ;;  %s352_s15 = sshll.u32 %s2286_s14, 4  ;;  %s2418_s15 = int_to_ptr.vmem [resolvable:$true] %s352_s15 }
  0x1b   : > { %s2420_s22 = sshll.u32 %s2287_s16, 4  ;;  %s2816_s5 = sld [smem:[#allocation22_spill]]  ;;  %s307_s22 = int_to_ptr.vmem [resolvable:$true] %s2420_s22 }
  0x1c   : > { %p2414_p12 = pnand %p2797_p9, %p1963_p11 }
  0x1e   : > { %p2430_p0 = pneg %p2414_p12 }
  0x21   : > { %s2069_s26 = scalar_lea.hbm %s2816_s5, 1024 }
  0x22   : > { %p2070_p13 = scmp.ne.s32.totalorder %s2816_s5, %s2069_s26  ;;  %p2076_p3 = scmp.lt.u32.totalorder %s2069_s26, %s2816_s5 }
  0x24   : > { %p2072_p1 = pnand %p2430_p0, %p2070_p13 }
  0x26   : > { %p2073_p2 = pneg %p2072_p1 }
  0x28   : > { %p2078_p4 = pnand %p2076_p3, %p2073_p2 }
  0x2a   : > { %2081 = shalt.err (!%p2078_p4)
}
  0x2b   : > { %s2082_s19 = scalar_lea.vmem %s2410_s12, 1024  ;;  %p2090_p9 = scmp.lt.s32.totalorder %s2410_s12, %s2410_s12 }
  0x2c   : > { %p2083_p7 = scmp.ne.s32.totalorder %s2410_s12, %s2082_s19  ;;  %p2091_p6 = scmp.lt.s32.totalorder %s2082_s19, %s2082_s19 }
  0x2e   : > { %p2085_p8 = pnand %p2083_p7, %p2430_p0  ;;  %p2092_p13 = por %p2091_p6, %p2090_p9 }
  0x30   : > { %p2086_p11 = pneg %p2085_p8 }
  0x32   : > { %p2093_p1 = pnand %p2092_p13, %p2086_p11 }
  0x34   : > { %2096 = shalt.err (!%p2093_p1)
}
  0x35   : > { %s2288_s24 = smov 64   ;;  %s2289_s26 = smov 4  }
  0x36   : > { %1969 = dma.hbm_to_vmem [thread:$0]  (!%p2414_p12), %s2816_s5, 1024, %s2410_s12, [#allocation6], %s2288_s24, %s2288_s24, %s2289_s26  }
  0x37   : > { %s2097_s19 = scalar_lea.hbm %s2789_s7, 1024 }
  0x38   : > { %p2098_p6 = scmp.ne.s32.totalorder %s2789_s7, %s2097_s19  ;;  %p2104_p3 = scmp.lt.u32.totalorder %s2097_s19, %s2789_s7 }
  0x3a   : > { %p2100_p9 = pnand %p2098_p6, %p2430_p0 }
  0x3c   : > { %p2101_p2 = pneg %p2100_p9 }
  0x3e   : > { %p2106_p4 = pnand %p2104_p3, %p2101_p2 }
  0x40   : > { %2109 = shalt.err (!%p2106_p4)
}
  0x41   : > { %s2110_s12 = scalar_lea.vmem %s2418_s15, 1024  ;;  %p2118_p13 = scmp.lt.s32.totalorder %s2418_s15, %s2418_s15 }
  0x42   : > { %p2111_p7 = scmp.ne.s32.totalorder %s2418_s15, %s2110_s12  ;;  %p2119_p1 = scmp.lt.s32.totalorder %s2110_s12, %s2110_s12 }
  0x44   : > { %p2113_p8 = pnand %p2111_p7, %p2430_p0  ;;  %p2120_p6 = por %p2119_p1, %p2118_p13 }
  0x46   : > { %p2114_p11 = pneg %p2113_p8 }
  0x48   : > { %p2121_p9 = pnand %p2120_p6, %p2114_p11 }
  0x4a   : > { %2124 = shalt.err (!%p2121_p9)
}
  0x4b   : > { %1975 = dma.hbm_to_vmem [thread:$0]  (!%p2414_p12), %s2789_s7, 1024, %s2418_s15, [#allocation9], %s2288_s24, %s2288_s24, %s2289_s26  }
  0x4c   : > { %s2125_s25 = scalar_lea.hbm %s2783_s1, 256 }
  0x4d   : > { %p2126_p2 = scmp.ne.s32.totalorder %s2783_s1, %s2125_s25  ;;  %p2132_p7 = scmp.lt.u32.totalorder %s2125_s25, %s2783_s1 }
  0x4f   : > { %p2128_p3 = pnand %p2126_p2, %p2430_p0 }
  0x51   : > { %p2129_p4 = pneg %p2128_p3 }
  0x53   : > { %p2134_p8 = pnand %p2132_p7, %p2129_p4 }
  0x55   : > { %2137 = shalt.err (!%p2134_p8)
}
  0x56   : > { %s2138_s12 = scalar_lea.vmem %s307_s22, 256  ;;  %p2146_p6 = scmp.lt.s32.totalorder %s307_s22, %s307_s22 }
  0x57   : > { %p2139_p11 = scmp.ne.s32.totalorder %s307_s22, %s2138_s12  ;;  %p2147_p9 = scmp.lt.s32.totalorder %s2138_s12, %s2138_s12 }
  0x59   : > { %p2141_p13 = pnand %p2139_p11, %p2430_p0  ;;  %p2148_p5 = por %p2147_p9, %p2146_p6 }
  0x5b   : > { %p2142_p1 = pneg %p2141_p13 }
  0x5d   : > { %p2149_p10 = pnand %p2148_p5, %p2142_p1 }
  0x5f   : > { %2152 = shalt.err (!%p2149_p10)
}
  0x60   : > { %1966 = dma.hbm_to_vmem [thread:$0]  (!%p2414_p12), %s2783_s1, 256, %s307_s22, [#allocation3], %s2288_s24, %s2288_s24, %s2289_s26  }
  0x61   : > { %s2290_s17 = smov [#allocation7]   ;;  %s2291_s28 = smov [#allocation10]  }
  0x62   : > { %s342_s20 = sshll.u32 %s2290_s17, 4  ;;  %s366_s25 = sshll.u32 %s2291_s28, 4  ;;  %s343_s20 = int_to_ptr.vmem [resolvable:$true] %s342_s20  ;;  %s367_s25 = int_to_ptr.vmem [resolvable:$true] %s366_s25 }
  0x63   : > { %s2153_s16 = scalar_lea.hbm %s2788_s6, 16 }
  0x64   : > { %p2154_p5 = scmp.ne.s32.totalorder %s2788_s6, %s2153_s16  ;;  %p2160_p3 = scmp.lt.u32.totalorder %s2153_s16, %s2788_s6 }
  0x66   : > { %p2156_p10 = pnand %p2154_p5, %p2430_p0 }
  0x68   : > { %p2157_p2 = pneg %p2156_p10 }
  0x6a   : > { %p2162_p4 = pnand %p2160_p3, %p2157_p2 }
  0x6c   : > { %2165 = shalt.err (!%p2162_p4)
}
  0x6d   : > { %s2166_s22 = scalar_lea.vmem %s343_s20, 16  ;;  %s2173_s24 = scalar_lea.vmem %s343_s20, 32 }
  0x6e   : > { %p2167_p7 = scmp.ne.s32.totalorder %s343_s20, %s2166_s22  ;;  %p2174_p13 = scmp.lt.s32.totalorder %s343_s20, %s343_s20 }
  0x6f   : > { %p2175_p1 = scmp.lt.s32.totalorder %s2173_s24, %s2166_s22 }
  0x70   : > { %p2169_p8 = pnand %p2167_p7, %p2430_p0 }
  0x71   : > { %p2176_p6 = por %p2175_p1, %p2174_p13 }
  0x72   : > { %p2170_p11 = pneg %p2169_p8 }
  0x74   : > { %p2177_p9 = pnand %p2176_p6, %p2170_p11 }
  0x76   : > { %2180 = shalt.err (!%p2177_p9)
}
  0x77   : > { %1972 = dma.hbm_to_vmem [thread:$0]  (!%p2414_p12), %s2788_s6, 16, %s343_s20, [#allocation6]  }
  0x78   : > { %s2181_s28 = scalar_lea.hbm %s2790_s8, 16 }
  0x79   : > { %p2182_p5 = scmp.ne.s32.totalorder %s2790_s8, %s2181_s28  ;;  %p2188_p3 = scmp.lt.u32.totalorder %s2181_s28, %s2790_s8 }
  0x7b   : > { %p2184_p10 = pnand %p2182_p5, %p2430_p0 }
  0x7d   : > { %p2185_p2 = pneg %p2184_p10 }
  0x7f   : > { %p2190_p4 = pnand %p2188_p3, %p2185_p2 }
  0x81   : > { %2193 = shalt.err (!%p2190_p4)
}
  0x82   : > { %s2194_s12 = scalar_lea.vmem %s367_s25, 16  ;;  %s2201_s20 = scalar_lea.vmem %s367_s25, 32 }
  0x83   : > { %p2195_p7 = scmp.ne.s32.totalorder %s367_s25, %s2194_s12  ;;  %p2202_p13 = scmp.lt.s32.totalorder %s367_s25, %s367_s25 }
  0x84   : > { %p2203_p1 = scmp.lt.s32.totalorder %s2201_s20, %s2194_s12 }
  0x85   : > { %p2197_p8 = pnand %p2195_p7, %p2430_p0 }
  0x86   : > { %p2204_p6 = por %p2203_p1, %p2202_p13 }
  0x87   : > { %p2198_p11 = pneg %p2197_p8 }
  0x89   : > { %p2205_p9 = pnand %p2204_p6, %p2198_p11 }
  0x8b   : > { %2208 = shalt.err (!%p2205_p9)
}
  0x8c   : > { %1978 = dma.hbm_to_vmem [thread:$0]  (!%p2414_p12), %s2790_s8, 16, %s367_s25, [#allocation9]  }
  0x8d   : > { %p2818_p5 = scmp.ne.s32.totalorder %s2814_s29, 0 }
  0x8e   : > { %p2819_p10 = scmp.eq.s32.totalorder (!%p2818_p5), %s2376_s21, 0 }
  0x8f   : > { %394 = sbr.rel (%p2818_p5) target bundleno = 1306 (0x51a), region = 64 }
  0x96   : > { %2254 = dma.done.wait (%p2819_p10), [#allocation3], 256   ;;  %p2820_p0 = pmov %p2819_p10 }
  0x98   : > { %2256 = vsyncadd (%p2820_p0), [#allocation3], 4294967040  ;;  %p2821_p2 = pmov %p2820_p0 }
  0x99   : > { %p2822_p3 = pmov %p2820_p0 }
  0x9a   : > { %2258 = dma.done.wait (%p2821_p2), [#allocation6], 1040  }
  0x9b   : > { %2260 = vsyncadd (%p2822_p3), [#allocation6], 4294966256  ;;  %p2823_p4 = pmov %p2820_p0 }
  0x9c   : > { %p2824_p12 = pmov %p2820_p0 }
  0x9d   : > { %2262 = dma.done.wait (%p2823_p4), [#allocation9], 1040  }
  0x9e   : > { %2264 = vsyncadd (%p2824_p12), [#allocation9], 4294966256  ;;  %s1576_s23 = sshll.u32 %s2376_s21, 4  ;;  %v2035_v0 = vld [vmem:[#allocation2] sm:$0xff]   ;;  %v2036_v1 = vld [vmem:[#allocation2 + $0x8] sm:$0xff]   ;;  %vm537_vm0 = vcmask 261120  }
  0x9f   : > { %p451_p7 = scmp.lt.s32.totalorder %s1576_s23, 31  ;;  %1721 = vmatprep.subr.bf16.mxu0 %v2035_v0  ;;  %v2045_v5 = vld [vmem:[%s2785_s3] sm:$0xff]   ;;  %v2046_v6 = vld [vmem:[%s2785_s3 + $0x8] sm:$0xff]   ;;  %v2047_v8 = vld [vmem:[%s2785_s3 + $0x10] sm:$0xff]   ;;  %s447_s25 = sand.u32 1, %s2275_s18  }
  0xa0   : > { %1722 = vmatpush3.bf16.msra.mxu0 %v2035_v0  ;;  %1741 = vmatprep.subr.bf16.mxu1 %v2045_v5  ;;  %v2048_v10 = vld [vmem:[%s2785_s3 + $0x18] sm:$0xff]   ;;  %v2049_v12 = vld [vmem:[%s2785_s3 + $0x20] sm:$0xff]   ;;  %v2050_v14 = vld [vmem:[%s2785_s3 + $0x28] sm:$0xff]   ;;  %s1630_s17 = sshll.u32 %s2376_s21, 11  ;;  %s2825_s16 = sld [smem:[#allocation23_spill]] }
  0xa1   : > { %s2837_s23 = smov (!%p451_p7, %s1576_s23), 31  ;;  %1723 = vmatprep.subr.bf16.mxu0 %v2036_v1  ;;  %1742 = vmatpush3.bf16.msra.mxu1 %v2045_v5  ;;  %v2051_v16 = vld [vmem:[%s2785_s3 + $0x30] sm:$0xff]   ;;  %v2052_v17 = vld [vmem:[%s2785_s3 + $0x38] sm:$0xff]   ;;  %v2055_v20 = vld [vmem:[#allocation5 + $0x10] sm:$0xff]   ;;  %s2741_s21 = scalar_lea.sflag [#allocation4], %s447_s25 }
  0xa2   : > { %s1577_s29 = sshll.u32 %s2837_s23, 2  ;;  %1743 = vmatprep.subr.bf16.mxu1 %v2046_v6  ;;  %v2053_v18 = vld [vmem:[#allocation5] sm:$0xff]   ;;  %v2054_v19 = vld [vmem:[#allocation5 + $0x8] sm:$0xff]   ;;  %v2056_v21 = vld [vmem:[#allocation5 + $0x18] sm:$0xff]   ;;  %p2826_p11 = scmp.ne.s32.totalorder %s2811_s27, 0 }
  0xa3   : > { %s2556_s24 = scalar_lea.vmem %s2782_s0, %s1577_s29  ;;  %v2057_v22 = vld [vmem:[#allocation5 + $0x20] sm:$0xff]   ;;  %v2058_v23 = vld [vmem:[#allocation5 + $0x28] sm:$0xff]   ;;  %v1578_v24 = vld [vmem:[%s2784_s2] ss:$0 sm:$0xff]  ;;  %s2292_s20 = smov [#allocation11]  }
  0xa4   : > { %v2037_v2 = vld [vmem:[%s2556_s24] sm:$0xff]   ;;  %v2038_v3 = vld [vmem:[%s2556_s24 + $0x8] sm:$0xff]   ;;  %1724 = vmatpush3.bf16.msra.mxu0 %v2036_v1  ;;  %v2039_v4 = vld [vmem:[%s2556_s24 + $0x10] sm:$0xff]   ;;  %s2213_s15 = sshll.u32 %s2292_s20, 4  ;;  %s2214_s15 = int_to_ptr.vmem [resolvable:$false] %s2213_s15 }
  0xa5   : > { %1725 = vmatprep.mubr.msk.bf16.mxu0 %vm537_vm0, %v2037_v2  ;;  %v2040_v7 = vld [vmem:[%s2556_s24 + $0x18] sm:$0xff]   ;;  %v2041_v9 = vld [vmem:[%s2556_s24 + $0x20] sm:$0xff]   ;;  %1744 = vmatpush3.bf16.msra.mxu1 %v2046_v6  ;;  %v2042_v11 = vld [vmem:[%s2556_s24 + $0x28] sm:$0xff]   ;;  %s2215_s22 = scalar_lea.vmem %s2214_s15, 4096 }
  0xa6   : > { %1745 = vmatprep.subr.bf16.mxu1 %v2047_v8  ;;  %v2043_v13 = vld [vmem:[%s2556_s24 + $0x30] sm:$0xff]   ;;  %v2044_v15 = vld [vmem:[%s2556_s24 + $0x38] sm:$0xff]   ;;  %1773 = vmatprep.subr.bf16.mxu0 %v2053_v18  ;;  %s1575_s24 = sshll.u32 %s447_s25, 7  ;;  %s2731_s19 = scalar_lea.hbm %s2825_s16, %s1630_s17 }
  0xa7   : > { %1726 = vmatmul.mubr.msk.bf16.vlgmr.msra.gmra.mrb[0].mxu0 %vm537_vm0, %v2038_v3  ;;  %s2712_s5 = scalar_lea.vmem [#allocation11], %s1575_s24 }
  0xa8   : > { %1729 = vmatprep.mubr.msk.bf16.mxu0 %vm537_vm0, %v2039_v4  ;;  %1774 = vmatpush3.bf16.msra.mxu0 %v2053_v18  ;;  %v2060_v18 = vld [vmem:[#allocation5 + $0x38] sm:$0xff]   ;;  %s1449_s28 = sshll.u32 %s2712_s5, 4  ;;  %s2733_s28 = int_to_ptr.vmem [resolvable:$true] %s1449_s28 }
  0xa9   : > { %1746 = vmatpush3.bf16.msra.mxu1 %v2047_v8  ;;  %1775 = vmatprep.subr.bf16.mxu0 %v2054_v19  ;;  %s2209_s12 = scalar_lea.vmem %s2733_s28, 2048  ;;  %p2216_p6 = scmp.lt.s32.totalorder %s2733_s28, %s2214_s15 }
  0xaa   : > { %1747 = vmatprep.subr.bf16.mxu1 %v2048_v10  ;;  %p2210_p8 = scmp.ne.s32.totalorder %s2733_s28, %s2209_s12  ;;  %p2217_p9 = scmp.lt.s32.totalorder %s2215_s22, %s2209_s12 }
  0xac   : > { %1776 = vmatpush3.bf16.msra.mxu0 %v2054_v19  ;;  %v2061_v19 = vld [vmem:[#allocation8] sm:$0xff]   ;;  %p2211_p13 = pnand %p2210_p8, %p2826_p11  ;;  %p2218_p5 = por %p2217_p9, %p2216_p6 }
  0xad   : > { %1748 = vmatpush3.bf16.msra.mxu1 %v2048_v10  ;;  %1777 = vmatprep.subr.bf16.mxu0 %v2055_v20 }
  0xae   : > { %1749 = vmatprep.subr.bf16.mxu1 %v2049_v12  ;;  %p2212_p1 = pneg %p2211_p13 }
  0xaf   : > { %1730 = vmatmul.mubr.msk.bf16.gmra.mrb[4].mxu0 %vm537_vm0, %v2040_v7 }
  0xb0   : > { %1733 = vmatprep.mubr.msk.bf16.mxu0 %vm537_vm0, %v2041_v9  ;;  %1778 = vmatpush3.bf16.msra.mxu0 %v2055_v20  ;;  %v2062_v20 = vld [vmem:[#allocation8 + $0x8] sm:$0xff]   ;;  %p2219_p10 = pnand %p2218_p5, %p2212_p1 }
  0xb1   : > { %1750 = vmatpush3.bf16.msra.mxu1 %v2049_v12  ;;  %1779 = vmatprep.subr.bf16.mxu0 %v2056_v21 }
  0xb2   : > { %1751 = vmatprep.subr.bf16.mxu1 %v2050_v14 }
  0xb4   : > { %1780 = vmatpush3.bf16.msra.mxu0 %v2056_v21  ;;  %v2063_v21 = vld [vmem:[#allocation8 + $0x10] sm:$0xff]  }
  0xb5   : > { %1752 = vmatpush3.bf16.msra.mxu1 %v2050_v14  ;;  %1781 = vmatprep.subr.bf16.mxu0 %v2057_v22 }
  0xb6   : > { %1753 = vmatprep.subr.bf16.mxu1 %v2051_v16 }
  0xb7   : > { %1734 = vmatmul.mubr.msk.bf16.gmra.mrb[8].mxu0 %vm537_vm0, %v2042_v11 }
  0xb8   : > { %1737 = vmatprep.mubr.msk.bf16.mxu0 %vm537_vm0, %v2043_v13  ;;  %1782 = vmatpush3.bf16.msra.mxu0 %v2057_v22  ;;  %v2064_v22 = vld [vmem:[#allocation8 + $0x18] sm:$0xff]  }
  0xb9   : > { %1754 = vmatpush3.bf16.msra.mxu1 %v2051_v16  ;;  %1783 = vmatprep.subr.bf16.mxu0 %v2058_v23 }
  0xba   : > { %1755 = vmatprep.subr.bf16.mxu1 %v2052_v17 }
  0xbc   : > { %1784 = vmatpush3.bf16.msra.mxu0 %v2058_v23  ;;  %v2065_v23 = vld [vmem:[#allocation8 + $0x20] sm:$0xff]  }
  0xbd   : > { %1756 = vmatpush3.bf16.msra.mxu1 %v2052_v17  ;;  %v2059_v17 = vld [vmem:[#allocation5 + $0x30] sm:$0xff]  }
  0xbe   : > { %1785 = vmatprep.subr.bf16.mxu0 %v2059_v17  ;;  %1805 = vmatprep.subr.bf16.mxu1 %v2061_v19 }
  0xbf   : > { %1738 = vmatmul.mubr.msk.bf16.gmra.mrb[12].mxu0 %vm537_vm0, %v2044_v15 }
  0xc0   : > { %1786 = vmatpush3.bf16.msra.mxu0 %v2059_v17 }
  0xc1   : > { %1787 = vmatprep.subr.bf16.mxu0 %v2060_v18 }
  0xc4   : > { %1788 = vmatpush3.bf16.msra.mxu0 %v2060_v18  ;;  %v2067_v18 = vld [vmem:[#allocation8 + $0x30] sm:$0xff]  }
 0x17a   : > { %v1727_v25 = vpop.f32.mrb[0].mxu0 }
 0x17b   : > { %v605_v26 = vadd.f32 %v1727_v25, %v1578_v24  ;;  %v596_v27 = vpop.f32.mrb[1].mxu0  ;;  %v1597_v25 = vld [vmem:[%s2786_s4] ss:$0 sm:$0xff] }
 0x17c   : > { %v597_v28 = vadd.f32 %v1578_v24, %v596_v27  ;;  %v1728_v29 = vpop.f32.mrb[2].mxu0 }
 0x17d   : > { %v608_v30 = vadd.f32 %v1728_v29, %v1578_v24  ;;  %v599_v31 = vpop.f32.mrb[3].mxu0  ;;  %v661_v33 = vmax.f32 %v605_v26, 0.0 }
 0x17e   : > { %v600_v32 = vadd.f32 %v1578_v24, %v599_v31  ;;  %v659_v35 = vmax.f32 %v597_v28, 0.0 }
 0x17f   : > { %v662_v34 = vmax.f32 %v608_v30, 0.0 }
 0x180   : > { %v660_v36 = vmax.f32 %v600_v32, 0.0 }
 0x181   : > { %v676_v37 = vpack.c.bf16 %v662_v34, %v661_v33 }
 0x182   : > { %v1731_v38 = vpop.f32.mrb[4].mxu0  ;;  %v675_v39 = vpack.c.bf16 %v660_v36, %v659_v35 }
 0x183   : > { %v621_v40 = vadd.f32 %v1731_v38, %v1578_v24  ;;  %v612_v41 = vpop.f32.mrb[5].mxu0 }
 0x184   : > { %v613_v42 = vadd.f32 %v1578_v24, %v612_v41  ;;  %v1732_v43 = vpop.f32.mrb[6].mxu0  ;;  %1757 = vmatprep.mubr.bf16.mxu1 %v675_v39 }
 0x185   : > { %v624_v44 = vadd.f32 %v1732_v43, %v1578_v24  ;;  %v615_v45 = vpop.f32.mrb[7].mxu0  ;;  %1758 = vmatmul.mubr.bf16.vlgmr.msra.gmra.mrb[0].mxu1 %v676_v37  ;;  %v665_v47 = vmax.f32 %v621_v40, 0.0 }
 0x186   : > { %v616_v46 = vadd.f32 %v1578_v24, %v615_v45  ;;  %v663_v49 = vmax.f32 %v613_v42, 0.0  ;;  %1806 = vmatpush3.bf16.msra.mxu1 %v2061_v19  ;;  %v2068_v19 = vld [vmem:[#allocation8 + $0x38] sm:$0xff]  }
 0x187   : > { %v666_v48 = vmax.f32 %v624_v44, 0.0  ;;  %1807 = vmatprep.subr.bf16.mxu1 %v2062_v20 }
 0x188   : > { %v664_v50 = vmax.f32 %v616_v46, 0.0 }
 0x189   : > { %v678_v51 = vpack.c.bf16 %v666_v48, %v665_v47 }
 0x18a   : > { %v677_v52 = vpack.c.bf16 %v664_v50, %v663_v49  ;;  %v1735_v53 = vpop.f32.mrb[8].mxu0  ;;  %1808 = vmatpush3.bf16.msra.mxu1 %v2062_v20  ;;  %v1251_v20 = vld [vmem:[%s2791_s9] sm:$0xff] }
 0x18b   : > { %v637_v54 = vadd.f32 %v1735_v53, %v1578_v24  ;;  %v628_v55 = vpop.f32.mrb[9].mxu0  ;;  %1809 = vmatprep.subr.bf16.mxu1 %v2063_v21 }
 0x18c   : > { %v629_v56 = vadd.f32 %v1578_v24, %v628_v55  ;;  %v1736_v57 = vpop.f32.mrb[10].mxu0  ;;  %1761 = vmatprep.mubr.bf16.mxu1 %v677_v52 }
 0x18d   : > { %v640_v58 = vadd.f32 %v1736_v57, %v1578_v24  ;;  %v631_v59 = vpop.f32.mrb[11].mxu0  ;;  %1762 = vmatmul.mubr.bf16.gmra.mrb[4].mxu1 %v678_v51  ;;  %v669_v61 = vmax.f32 %v637_v54, 0.0 }
 0x18e   : > { %v632_v60 = vadd.f32 %v1578_v24, %v631_v59  ;;  %v667_v63 = vmax.f32 %v629_v56, 0.0  ;;  %1810 = vmatpush3.bf16.msra.mxu1 %v2063_v21  ;;  %v1252_v21 = vld [vmem:[%s2791_s9 + $0x8] sm:$0xff] }
 0x18f   : > { %v670_v62 = vmax.f32 %v640_v58, 0.0  ;;  %1811 = vmatprep.subr.bf16.mxu1 %v2064_v22 }
 0x190   : > { %v668_v0 = vmax.f32 %v632_v60, 0.0 }
 0x191   : > { %v680_v1 = vpack.c.bf16 %v670_v62, %v669_v61 }
 0x192   : > { %v679_v2 = vpack.c.bf16 %v668_v0, %v667_v63  ;;  %v1739_v3 = vpop.f32.mrb[12].mxu0  ;;  %1812 = vmatpush3.bf16.msra.mxu1 %v2064_v22  ;;  %v1253_v22 = vld [vmem:[%s2791_s9 + $0x10] sm:$0xff] }
 0x193   : > { %v653_v4 = vadd.f32 %v1739_v3, %v1578_v24  ;;  %v644_v5 = vpop.f32.mrb[13].mxu0  ;;  %1813 = vmatprep.subr.bf16.mxu1 %v2065_v23 }
 0x194   : > { %v645_v6 = vadd.f32 %v1578_v24, %v644_v5  ;;  %v1740_v7 = vpop.f32.mrb[14].mxu0  ;;  %1765 = vmatprep.mubr.bf16.mxu1 %v679_v2 }
 0x195   : > { %v656_v8 = vadd.f32 %v1740_v7, %v1578_v24  ;;  %v647_v9 = vpop.f32.mrb[15].mxu0  ;;  %1766 = vmatmul.mubr.bf16.gmra.mrb[8].mxu1 %v680_v1  ;;  %v673_v11 = vmax.f32 %v653_v4, 0.0 }
 0x196   : > { %v648_v10 = vadd.f32 %v1578_v24, %v647_v9  ;;  %v671_v13 = vmax.f32 %v645_v6, 0.0  ;;  %v2066_v24 = vld [vmem:[#allocation8 + $0x28] sm:$0xff]   ;;  %1814 = vmatpush3.bf16.msra.mxu1 %v2065_v23  ;;  %v1893_v23 = vpack.c.bf16 %v1252_v21, %v1251_v20 }
 0x197   : > { %v674_v12 = vmax.f32 %v656_v8, 0.0  ;;  %1815 = vmatprep.subr.bf16.mxu1 %v2066_v24 }
 0x198   : > { %v672_v14 = vmax.f32 %v648_v10, 0.0  ;;  %1894 = vmatprep.subr.bf16.mxu0 %v1893_v23 }
 0x199   : > { %v682_v15 = vpack.c.bf16 %v674_v12, %v673_v11 }
 0x19a   : > { %v681_v16 = vpack.c.bf16 %v672_v14, %v671_v13  ;;  %1816 = vmatpush3.bf16.msra.mxu1 %v2066_v24  ;;  %v1254_v24 = vld [vmem:[%s2791_s9 + $0x18] sm:$0xff] }
 0x19b   : > { %1817 = vmatprep.subr.bf16.mxu1 %v2067_v18 }
 0x19c   : > { %1769 = vmatprep.mubr.bf16.mxu1 %v681_v16 }
 0x19d   : > { %1770 = vmatmul.mubr.bf16.gmra.mrb[12].mxu1 %v682_v15 }
 0x19e   : > { %1818 = vmatpush3.bf16.msra.mxu1 %v2067_v18 }
 0x19f   : > { %1819 = vmatprep.subr.bf16.mxu1 %v2068_v19 }
 0x1a2   : > { %1820 = vmatpush3.bf16.msra.mxu1 %v2068_v19 }
 0x1a3   : > { %1925 = vmatprep.subr.bf16.mxu1 %v1893_v23 }
 0x258   : > { %v1759_v26 = vpop.f32.mrb[0].mxu1 }
 0x259   : > { %v797_v27 = vadd.f32 %v1759_v26, %v1597_v25  ;;  %v788_v28 = vpop.f32.mrb[1].mxu1  ;;  %v1255_v26 = vld [vmem:[%s2791_s9 + $0x20] sm:$0xff] }
 0x25a   : > { %v789_v29 = vadd.f32 %v1597_v25, %v788_v28  ;;  %v1760_v30 = vpop.f32.mrb[2].mxu1 }
 0x25b   : > { %v800_v31 = vadd.f32 %v1760_v30, %v1597_v25  ;;  %v791_v32 = vpop.f32.mrb[3].mxu1  ;;  %v853_v34 = vmax.f32 %v797_v27, 0.0  ;;  %v1256_v27 = vld [vmem:[%s2791_s9 + $0x28] sm:$0xff]  ;;  %v1258_v30 = vld [vmem:[%s2791_s9 + $0x38] sm:$0xff] }
 0x25c   : > { %v792_v33 = vadd.f32 %v1597_v25, %v791_v32  ;;  %v851_v36 = vmax.f32 %v789_v29, 0.0  ;;  %v2625_v28 = vpack.c.bf16 %v1256_v27, %v1255_v26  ;;  %v1257_v29 = vld [vmem:[%s2791_s9 + $0x30] sm:$0xff]  ;;  %v1259_v32 = vld [vmem:[%s2791_s9 + $0x40] sm:$0xff] }
 0x25d   : > { %v854_v35 = vmax.f32 %v800_v31, 0.0  ;;  %v2635_v31 = vpack.c.bf16 %v1258_v30, %v1257_v29 }
 0x25e   : > { %v852_v37 = vmax.f32 %v792_v33, 0.0  ;;  %v1260_v33 = vld [vmem:[%s2791_s9 + $0x48] sm:$0xff] }
 0x25f   : > { %v868_v38 = vpack.c.bf16 %v854_v35, %v853_v34  ;;  %v2645_v34 = vpack.c.bf16 %v1260_v33, %v1259_v32  ;;  %v1261_v35 = vld [vmem:[%s2791_s9 + $0x50] sm:$0xff] }
 0x260   : > { %v867_v39 = vpack.c.bf16 %v852_v37, %v851_v36  ;;  %v1763_v40 = vpop.f32.mrb[4].mxu1  ;;  %v1262_v36 = vld [vmem:[%s2791_s9 + $0x58] sm:$0xff] }
 0x261   : > { %v813_v41 = vadd.f32 %v1763_v40, %v1597_v25  ;;  %v804_v42 = vpop.f32.mrb[5].mxu1  ;;  %v2655_v37 = vpack.c.bf16 %v1262_v36, %v1261_v35  ;;  %v1266_v35 = vld [vmem:[%s2791_s9 + $0x78] sm:$0xff] }
 0x262   : > { %v805_v43 = vadd.f32 %v1597_v25, %v804_v42  ;;  %v1764_v44 = vpop.f32.mrb[6].mxu1  ;;  %1789 = vmatprep.mubr.bf16.mxu0 %v867_v39  ;;  %v1264_v39 = vld [vmem:[%s2791_s9 + $0x68] sm:$0xff] }
 0x263   : > { %v816_v45 = vadd.f32 %v1764_v44, %v1597_v25  ;;  %v807_v46 = vpop.f32.mrb[7].mxu1  ;;  %1790 = vmatmul.mubr.bf16.vlgmr.msra.gmra.mrb[16].mxu0 %v868_v38  ;;  %v857_v48 = vmax.f32 %v813_v41, 0.0  ;;  %v1263_v38 = vld [vmem:[%s2791_s9 + $0x60] sm:$0xff]  ;;  %v2670_v41 = vld [vmem:[#allocation7] ss:$0 sm:$0xff] }
 0x264   : > { %v808_v47 = vadd.f32 %v1597_v25, %v807_v46  ;;  %v855_v50 = vmax.f32 %v805_v43, 0.0  ;;  %1896 = vmatpush3.bf16.msra.mxu0 %v1893_v23  ;;  %v2665_v40 = vpack.c.bf16 %v1264_v39, %v1263_v38 }
 0x265   : > { %v858_v49 = vmax.f32 %v816_v45, 0.0 }
 0x266   : > { %v856_v51 = vmax.f32 %v808_v47, 0.0 }
 0x267   : > { %v870_v52 = vpack.c.bf16 %v858_v49, %v857_v48 }
 0x268   : > { %v869_v53 = vpack.c.bf16 %v856_v51, %v855_v50  ;;  %v1767_v54 = vpop.f32.mrb[8].mxu1 }
 0x269   : > { %v829_v55 = vadd.f32 %v1767_v54, %v1597_v25  ;;  %v820_v56 = vpop.f32.mrb[9].mxu1 }
 0x26a   : > { %v821_v57 = vadd.f32 %v1597_v25, %v820_v56  ;;  %v1768_v58 = vpop.f32.mrb[10].mxu1  ;;  %1793 = vmatprep.mubr.bf16.mxu0 %v869_v53 }
 0x26b   : > { %v832_v59 = vadd.f32 %v1768_v58, %v1597_v25  ;;  %v823_v60 = vpop.f32.mrb[11].mxu1  ;;  %1794 = vmatmul.mubr.bf16.gmra.mrb[20].mxu0 %v870_v52  ;;  %v861_v62 = vmax.f32 %v829_v55, 0.0 }
 0x26c   : > { %v824_v61 = vadd.f32 %v1597_v25, %v823_v60  ;;  %v859_v0 = vmax.f32 %v821_v57, 0.0 }
 0x26d   : > { %v862_v63 = vmax.f32 %v832_v59, 0.0 }
 0x26e   : > { %v860_v1 = vmax.f32 %v824_v61, 0.0 }
 0x26f   : > { %v872_v2 = vpack.c.bf16 %v862_v63, %v861_v62 }
 0x270   : > { %v871_v3 = vpack.c.bf16 %v860_v1, %v859_v0  ;;  %v1771_v4 = vpop.f32.mrb[12].mxu1 }
 0x271   : > { %v845_v5 = vadd.f32 %v1771_v4, %v1597_v25  ;;  %v836_v6 = vpop.f32.mrb[13].mxu1 }
 0x272   : > { %v837_v7 = vadd.f32 %v1597_v25, %v836_v6  ;;  %v1772_v8 = vpop.f32.mrb[14].mxu1  ;;  %1797 = vmatprep.mubr.bf16.mxu0 %v871_v3 }
 0x273   : > { %v848_v9 = vadd.f32 %v1772_v8, %v1597_v25  ;;  %v839_v10 = vpop.f32.mrb[15].mxu1  ;;  %1798 = vmatmul.mubr.bf16.gmra.mrb[24].mxu0 %v872_v2  ;;  %v865_v12 = vmax.f32 %v845_v5, 0.0 }
 0x274   : > { %v840_v11 = vadd.f32 %v1597_v25, %v839_v10  ;;  %v863_v14 = vmax.f32 %v837_v7, 0.0  ;;  %v2616_v25 = vpack.c.bf16 %v1254_v24, %v1253_v22 }
 0x275   : > { %v866_v13 = vmax.f32 %v848_v9, 0.0 }
 0x276   : > { %v864_v15 = vmax.f32 %v840_v11, 0.0  ;;  %1898 = vmatprep.subr.bf16.mxu0 %v2616_v25 }
 0x277   : > { %v874_v16 = vpack.c.bf16 %v866_v13, %v865_v12  ;;  %1900 = vmatpush3.bf16.msra.mxu0 %v2616_v25 }
 0x278   : > { %v873_v17 = vpack.c.bf16 %v864_v15, %v863_v14  ;;  %1902 = vmatprep.subr.bf16.mxu0 %v2625_v28 }
 0x27a   : > { %1801 = vmatprep.mubr.bf16.mxu0 %v873_v17 }
 0x27b   : > { %1802 = vmatmul.mubr.bf16.gmra.mrb[28].mxu0 %v874_v16 }
 0x27c   : > { %1904 = vmatpush3.bf16.msra.mxu0 %v2625_v28 }
 0x27d   : > { %1906 = vmatprep.subr.bf16.mxu0 %v2635_v31 }
 0x280   : > { %1908 = vmatpush3.bf16.msra.mxu0 %v2635_v31 }
 0x281   : > { %1910 = vmatprep.subr.bf16.mxu0 %v2645_v34 }
 0x284   : > { %1912 = vmatpush3.bf16.msra.mxu0 %v2645_v34 }
 0x285   : > { %1914 = vmatprep.subr.bf16.mxu0 %v2655_v37 }
 0x288   : > { %1916 = vmatpush3.bf16.msra.mxu0 %v2655_v37 }
 0x289   : > { %1918 = vmatprep.subr.bf16.mxu0 %v2665_v40 }
 0x28c   : > { %1920 = vmatpush3.bf16.msra.mxu0 %v2665_v40 }
 0x336   : > { %v1791_v42 = vpop.f32.mrb[16].mxu0 }
 0x337   : > { %v989_v43 = vadd.f32 %v1791_v42, %v2670_v41  ;;  %v980_v44 = vpop.f32.mrb[17].mxu0 }
 0x338   : > { %v981_v45 = vadd.f32 %v2670_v41, %v980_v44  ;;  %v1792_v46 = vpop.f32.mrb[18].mxu0 }
 0x339   : > { %v992_v47 = vadd.f32 %v1792_v46, %v2670_v41  ;;  %v983_v48 = vpop.f32.mrb[19].mxu0  ;;  %v1045_v50 = vmax.f32 %v989_v43, 0.0 }
 0x33a   : > { %v984_v49 = vadd.f32 %v2670_v41, %v983_v48  ;;  %v1043_v52 = vmax.f32 %v981_v45, 0.0 }
 0x33b   : > { %v1046_v51 = vmax.f32 %v992_v47, 0.0 }
 0x33c   : > { %v1044_v53 = vmax.f32 %v984_v49, 0.0 }
 0x33d   : > { %v1060_v54 = vpack.c.bf16 %v1046_v51, %v1045_v50 }
 0x33e   : > { %v1059_v55 = vpack.c.bf16 %v1044_v53, %v1043_v52  ;;  %v1795_v56 = vpop.f32.mrb[20].mxu0 }
 0x33f   : > { %v1005_v57 = vadd.f32 %v1795_v56, %v2670_v41  ;;  %v996_v58 = vpop.f32.mrb[21].mxu0 }
 0x340   : > { %v997_v59 = vadd.f32 %v2670_v41, %v996_v58  ;;  %v1796_v60 = vpop.f32.mrb[22].mxu0  ;;  %1821 = vmatprep.mubr.bf16.mxu1 %v1059_v55 }
 0x341   : > { %v1008_v61 = vadd.f32 %v1796_v60, %v2670_v41  ;;  %v999_v62 = vpop.f32.mrb[23].mxu0  ;;  %1822 = vmatmul.mubr.bf16.vlgmr.msra.gmra.mrb[16].mxu1 %v1060_v54  ;;  %v1049_v0 = vmax.f32 %v1005_v57, 0.0 }
 0x342   : > { %v1000_v63 = vadd.f32 %v2670_v41, %v999_v62  ;;  %1933 = vmatpush3.bf16.msra.mxu1 %v1893_v23  ;;  %v1047_v2 = vmax.f32 %v997_v59, 0.0 }
 0x343   : > { %v1050_v1 = vmax.f32 %v1008_v61, 0.0  ;;  %1926 = vmatprep.subr.bf16.mxu1 %v2616_v25 }
 0x344   : > { %v1048_v3 = vmax.f32 %v1000_v63, 0.0 }
 0x345   : > { %v1062_v4 = vpack.c.bf16 %v1050_v1, %v1049_v0 }
 0x346   : > { %v1061_v5 = vpack.c.bf16 %v1048_v3, %v1047_v2  ;;  %v1799_v6 = vpop.f32.mrb[24].mxu0  ;;  %1934 = vmatpush3.bf16.msra.mxu1 %v2616_v25 }
 0x347   : > { %v1021_v7 = vadd.f32 %v1799_v6, %v2670_v41  ;;  %v1012_v8 = vpop.f32.mrb[25].mxu0  ;;  %1927 = vmatprep.subr.bf16.mxu1 %v2625_v28 }
 0x348   : > { %v1013_v9 = vadd.f32 %v2670_v41, %v1012_v8  ;;  %v1800_v10 = vpop.f32.mrb[26].mxu0  ;;  %1825 = vmatprep.mubr.bf16.mxu1 %v1061_v5 }
 0x349   : > { %v1024_v11 = vadd.f32 %v1800_v10, %v2670_v41  ;;  %v1015_v12 = vpop.f32.mrb[27].mxu0  ;;  %1826 = vmatmul.mubr.bf16.gmra.mrb[20].mxu1 %v1062_v4  ;;  %v1053_v14 = vmax.f32 %v1021_v7, 0.0 }
 0x34a   : > { %v1016_v13 = vadd.f32 %v2670_v41, %v1015_v12  ;;  %1935 = vmatpush3.bf16.msra.mxu1 %v2625_v28  ;;  %v1051_v16 = vmax.f32 %v1013_v9, 0.0 }
 0x34b   : > { %v1054_v15 = vmax.f32 %v1024_v11, 0.0  ;;  %1928 = vmatprep.subr.bf16.mxu1 %v2635_v31 }
 0x34c   : > { %v1052_v17 = vmax.f32 %v1016_v13, 0.0 }
 0x34d   : > { %v1064_v18 = vpack.c.bf16 %v1054_v15, %v1053_v14 }
 0x34e   : > { %v1063_v19 = vpack.c.bf16 %v1052_v17, %v1051_v16  ;;  %v1803_v20 = vpop.f32.mrb[28].mxu0  ;;  %1936 = vmatpush3.bf16.msra.mxu1 %v2635_v31 }
 0x34f   : > { %v1037_v21 = vadd.f32 %v1803_v20, %v2670_v41  ;;  %v1028_v22 = vpop.f32.mrb[29].mxu0  ;;  %1929 = vmatprep.subr.bf16.mxu1 %v2645_v34 }
 0x350   : > { %v1029_v23 = vadd.f32 %v2670_v41, %v1028_v22  ;;  %v1804_v24 = vpop.f32.mrb[30].mxu0  ;;  %1829 = vmatprep.mubr.bf16.mxu1 %v1063_v19  ;;  %v1624_v22 = vld [vmem:[%s2792_s10] ss:$0 sm:$0xff] }
 0x351   : > { %v1040_v25 = vadd.f32 %v1804_v24, %v2670_v41  ;;  %v1031_v26 = vpop.f32.mrb[31].mxu0  ;;  %1830 = vmatmul.mubr.bf16.gmra.mrb[24].mxu1 %v1064_v18  ;;  %v1057_v28 = vmax.f32 %v1037_v21, 0.0 }
 0x352   : > { %v1032_v27 = vadd.f32 %v2670_v41, %v1031_v26  ;;  %1937 = vmatpush3.bf16.msra.mxu1 %v2645_v34  ;;  %v1055_v30 = vmax.f32 %v1029_v23, 0.0  ;;  %v1265_v34 = vld [vmem:[%s2791_s9 + $0x70] sm:$0xff] }
 0x353   : > { %v1058_v29 = vmax.f32 %v1040_v25, 0.0  ;;  %1930 = vmatprep.subr.bf16.mxu1 %v2655_v37  ;;  %v1921_v36 = vpack.c.bf16 %v1266_v35, %v1265_v34 }
 0x354   : > { %v1056_v31 = vmax.f32 %v1032_v27, 0.0 }
 0x355   : > { %v1066_v32 = vpack.c.bf16 %v1058_v29, %v1057_v28  ;;  %1922 = vmatprep.subr.bf16.mxu0 %v1921_v36 }
 0x356   : > { %v1065_v33 = vpack.c.bf16 %v1056_v31, %v1055_v30  ;;  %1938 = vmatpush3.bf16.msra.mxu1 %v2655_v37  ;;  %1924 = vmatpush3.bf16.msra.mxu0 %v1921_v36  ;;  %v1615_v37 = vld [vmem:[#allocation10] ss:$0 sm:$0xff] }
 0x357   : > { %1931 = vmatprep.subr.bf16.mxu1 %v2665_v40 }
 0x358   : > { %1833 = vmatprep.mubr.bf16.mxu1 %v1065_v33 }
 0x359   : > { %1834 = vmatmul.mubr.bf16.gmra.mrb[28].mxu1 %v1066_v32 }
 0x35a   : > { %1939 = vmatpush3.bf16.msra.mxu1 %v2665_v40 }
 0x35b   : > { %1932 = vmatprep.subr.bf16.mxu1 %v1921_v36 }
 0x35e   : > { %1940 = vmatpush3.bf16.msra.mxu1 %v1921_v36 }
 0x414   : > { %v1823_v38 = vpop.f32.mrb[16].mxu1 }
 0x415   : > { %v1172_v39 = vpop.f32.mrb[17].mxu1  ;;  %v1181_v43 = vadd.f32 %v1823_v38, %v1615_v37 }
 0x416   : > { %v1173_v41 = vadd.f32 %v1615_v37, %v1172_v39  ;;  %v1824_v42 = vpop.f32.mrb[18].mxu1 }
 0x417   : > { %v1175_v40 = vpop.f32.mrb[19].mxu1  ;;  %v1184_v46 = vadd.f32 %v1824_v42, %v1615_v37  ;;  %v1237_v48 = vmax.f32 %v1181_v43, 0.0 }
 0x418   : > { %v1235_v44 = vmax.f32 %v1173_v41, 0.0  ;;  %v1176_v45 = vadd.f32 %v1615_v37, %v1175_v40 }
 0x419   : > { %v1238_v51 = vmax.f32 %v1184_v46, 0.0 }
 0x41a   : > { %v1236_v47 = vmax.f32 %v1176_v45, 0.0  ;;  %1869 = vmatprep.mubr.f32.mxu0 %v1235_v44 }
 0x41c   : > { %v1827_v49 = vpop.f32.mrb[20].mxu1  ;;  %1870 = vmatmul.mubr.f32.vlgmr.msra.gmra.mrb[32].mxu0 %v1236_v47 }
 0x41d   : > { %v1188_v50 = vpop.f32.mrb[21].mxu1  ;;  %1872 = vmatprep.mubr.f32.mxu0 %v1237_v48  ;;  %v1197_v54 = vadd.f32 %v1827_v49, %v1615_v37 }
 0x41e   : > { %v1189_v52 = vadd.f32 %v1615_v37, %v1188_v50  ;;  %v1828_v53 = vpop.f32.mrb[22].mxu1 }
 0x41f   : > { %v1191_v55 = vpop.f32.mrb[23].mxu1  ;;  %v1200_v58 = vadd.f32 %v1828_v53, %v1615_v37  ;;  %v1241_v60 = vmax.f32 %v1197_v54, 0.0 }
 0x420   : > { %v1239_v56 = vmax.f32 %v1189_v52, 0.0  ;;  %v1192_v57 = vadd.f32 %v1615_v37, %v1191_v55  ;;  %1873 = vmatmul.mubr.f32.gmra.mrb[34].mxu0 %v1238_v51 }
 0x421   : > { %v1242_v63 = vmax.f32 %v1200_v58, 0.0 }
 0x422   : > { %v1240_v59 = vmax.f32 %v1192_v57, 0.0  ;;  %1875 = vmatprep.mubr.f32.mxu0 %v1239_v56 }
 0x424   : > { %v1831_v61 = vpop.f32.mrb[24].mxu1  ;;  %1876 = vmatmul.mubr.f32.gmra.mrb[36].mxu0 %v1240_v59 }
 0x425   : > { %v1204_v62 = vpop.f32.mrb[25].mxu1  ;;  %1878 = vmatprep.mubr.f32.mxu0 %v1241_v60  ;;  %v1213_v2 = vadd.f32 %v1831_v61, %v1615_v37 }
 0x426   : > { %v1205_v0 = vadd.f32 %v1615_v37, %v1204_v62  ;;  %v1832_v1 = vpop.f32.mrb[26].mxu1 }
 0x427   : > { %v1207_v3 = vpop.f32.mrb[27].mxu1  ;;  %v1216_v6 = vadd.f32 %v1832_v1, %v1615_v37  ;;  %v1245_v8 = vmax.f32 %v1213_v2, 0.0 }
 0x428   : > { %v1243_v4 = vmax.f32 %v1205_v0, 0.0  ;;  %v1208_v5 = vadd.f32 %v1615_v37, %v1207_v3  ;;  %1879 = vmatmul.mubr.f32.gmra.mrb[38].mxu0 %v1242_v63 }
 0x429   : > { %v1246_v12 = vmax.f32 %v1216_v6, 0.0 }
 0x42a   : > { %v1244_v7 = vmax.f32 %v1208_v5, 0.0  ;;  %1881 = vmatprep.mubr.f32.mxu0 %v1243_v4 }
 0x42c   : > { %v1835_v9 = vpop.f32.mrb[28].mxu1  ;;  %1882 = vmatmul.mubr.f32.gmra.mrb[40].mxu0 %v1244_v7 }
 0x42d   : > { %v1229_v10 = vadd.f32 %v1835_v9, %v1615_v37  ;;  %v1220_v11 = vpop.f32.mrb[29].mxu1  ;;  %1884 = vmatprep.mubr.f32.mxu0 %v1245_v8 }
 0x42e   : > { %v1221_v13 = vadd.f32 %v1615_v37, %v1220_v11  ;;  %v1836_v14 = vpop.f32.mrb[30].mxu1 }
 0x42f   : > { %v1249_v15 = vmax.f32 %v1229_v10, 0.0  ;;  %v1232_v16 = vadd.f32 %v1836_v14, %v1615_v37  ;;  %v1223_v17 = vpop.f32.mrb[31].mxu1 }
 0x430   : > { %v1247_v18 = vmax.f32 %v1221_v13, 0.0  ;;  %v1224_v19 = vadd.f32 %v1615_v37, %v1223_v17  ;;  %1885 = vmatmul.mubr.f32.gmra.mrb[42].mxu0 %v1246_v12 }
 0x431   : > { %v1250_v20 = vmax.f32 %v1232_v16, 0.0  ;;  %1890 = vmatprep.mubr.f32.mxu1 %v1249_v15 }
 0x432   : > { %v1248_v21 = vmax.f32 %v1224_v19, 0.0  ;;  %1887 = vmatprep.mubr.f32.mxu0 %v1247_v18 }
 0x433   : > { %1891 = vmatmul.mubr.f32.vlgmr.msra.gmra.mrb[32].mxu1 %v1250_v20 }
 0x434   : > { %1888 = vmatmul.mubr.f32.gmra.mrb[44].mxu0 %v1248_v21 }
 0x4ef   : > { %v1871_v23 = vpop.f32.mrb[32].mxu0 }
 0x4f0   : > { %v1346_v24 = vadd.f32 %v1871_v23, %v1624_v22  ;;  %v1340_v25 = vpop.f32.mrb[33].mxu0 }
 0x4f1   : > { %v1341_v26 = vadd.f32 %v1624_v22, %v1340_v25 }
 0x4f2   : > { %1420 = vst [vmem:[%s2712_s5 + $0x8] sm:$0xff] %v1346_v24 }
 0x4f3   : > { %1419 = vst [vmem:[%s2712_s5] sm:$0xff] %v1341_v26  ;;  %v1874_v27 = vpop.f32.mrb[34].mxu0 }
 0x4f4   : > { %v1356_v28 = vadd.f32 %v1874_v27, %v1624_v22  ;;  %v1350_v29 = vpop.f32.mrb[35].mxu0 }
 0x4f5   : > { %v1351_v30 = vadd.f32 %v1624_v22, %v1350_v29 }
 0x4f6   : > { %1422 = vst [vmem:[%s2712_s5 + $0x18] sm:$0xff] %v1356_v28 }
 0x4f7   : > { %1421 = vst [vmem:[%s2712_s5 + $0x10] sm:$0xff] %v1351_v30  ;;  %v1877_v31 = vpop.f32.mrb[36].mxu0 }
 0x4f8   : > { %v1366_v32 = vadd.f32 %v1877_v31, %v1624_v22  ;;  %v1360_v33 = vpop.f32.mrb[37].mxu0 }
 0x4f9   : > { %v1361_v34 = vadd.f32 %v1624_v22, %v1360_v33 }
 0x4fa   : > { %1424 = vst [vmem:[%s2712_s5 + $0x28] sm:$0xff] %v1366_v32 }
 0x4fb   : > { %1423 = vst [vmem:[%s2712_s5 + $0x20] sm:$0xff] %v1361_v34  ;;  %v1880_v35 = vpop.f32.mrb[38].mxu0 }
 0x4fc   : > { %v1376_v36 = vadd.f32 %v1880_v35, %v1624_v22  ;;  %v1370_v37 = vpop.f32.mrb[39].mxu0 }
 0x4fd   : > { %v1371_v38 = vadd.f32 %v1624_v22, %v1370_v37 }
 0x4fe   : > { %1426 = vst [vmem:[%s2712_s5 + $0x38] sm:$0xff] %v1376_v36 }
 0x4ff   : > { %1425 = vst [vmem:[%s2712_s5 + $0x30] sm:$0xff] %v1371_v38  ;;  %v1883_v39 = vpop.f32.mrb[40].mxu0 }
 0x500   : > { %v1386_v41 = vadd.f32 %v1883_v39, %v1624_v22  ;;  %v1380_v42 = vpop.f32.mrb[41].mxu0 }
 0x501   : > { %v1381_v43 = vadd.f32 %v1624_v22, %v1380_v42 }
 0x502   : > { %1428 = vst [vmem:[%s2712_s5 + $0x48] sm:$0xff] %v1386_v41 }
 0x503   : > { %1427 = vst [vmem:[%s2712_s5 + $0x40] sm:$0xff] %v1381_v43  ;;  %v1886_v40 = vpop.f32.mrb[42].mxu0 }
 0x504   : > { %v1396_v44 = vadd.f32 %v1886_v40, %v1624_v22  ;;  %v1390_v45 = vpop.f32.mrb[43].mxu0 }
 0x505   : > { %v1391_v46 = vadd.f32 %v1624_v22, %v1390_v45 }
 0x506   : > { %1430 = vst [vmem:[%s2712_s5 + $0x58] sm:$0xff] %v1396_v44  ;;  %v1892_v47 = vpop.f32.mrb[32].mxu1 }
 0x507   : > { %1429 = vst [vmem:[%s2712_s5 + $0x50] sm:$0xff] %v1391_v46  ;;  %v1416_v48 = vadd.f32 %v1892_v47, %v1624_v22  ;;  %v1889_v49 = vpop.f32.mrb[44].mxu0  ;;  %v1410_v50 = vpop.f32.mrb[33].mxu1 }
 0x508   : > { %v1406_v51 = vadd.f32 %v1889_v49, %v1624_v22  ;;  %v1411_v52 = vadd.f32 %v1624_v22, %v1410_v50  ;;  %v1400_v53 = vpop.f32.mrb[45].mxu0 }
 0x509   : > { %1434 = vst [vmem:[%s2712_s5 + $0x78] sm:$0xff] %v1416_v48  ;;  %v1401_v54 = vadd.f32 %v1624_v22, %v1400_v53 }
 0x50a   : > { %1432 = vst [vmem:[%s2712_s5 + $0x68] sm:$0xff] %v1406_v51  ;;  %1433 = vst [vmem:[%s2712_s5 + $0x70] sm:$0xff] %v1411_v52 }
 0x50b   : > { %1431 = vst [vmem:[%s2712_s5 + $0x60] sm:$0xff] %v1401_v54 }
 0x50c   : > { %2222 = shalt.err (!%p2219_p10)
}
 0x50d   : > { %s2223_s23 = scalar_lea.hbm %s2731_s19, 2048  ;;  %s2227_s25 = scalar_lea.hbm %s2825_s16, 4096 }
 0x50e   : > { %p2224_p0 = scmp.ne.s32.totalorder %s2731_s19, %s2223_s23  ;;  %p2228_p4 = scmp.lt.u32.totalorder %s2731_s19, %s2825_s16 }
 0x50f   : > { %p2229_p12 = scmp.lt.u32.totalorder %s2227_s25, %s2223_s23  ;;  %p2231_p8 = scmp.lt.u32.totalorder %s2223_s23, %s2731_s19 }
 0x510   : > { %p2225_p2 = pnand %p2224_p0, %p2826_p11 }
 0x511   : > { %p2230_p7 = por %p2229_p12, %p2228_p4 }
 0x512   : > { %p2226_p3 = pneg %p2225_p2 }
 0x513   : > { %p2232_p13 = por %p2231_p8, %p2230_p7 }
 0x515   : > { %p2233_p1 = pnand %p2232_p13, %p2226_p3 }
 0x517   : > { %2236 = shalt.err (!%p2233_p1)
}
 0x518   : > { %s2293_s11 = smov 128   ;;  %s2294_s5 = smov 8  }
 0x519   : > { %1961 = dma.vmem_to_hbm [thread:$0]  (%p2826_p11), %s2733_s28, 2048, %s2731_s19, %s2741_s21, %s2293_s11, %s2293_s11, %s2294_s5  }
 0x51a PF: > { %s2827_s17 = sld [smem:[#allocation18_spill]]  ;;  %s2828_s30 = sld [smem:[#allocation16_spill]] }
 0x51b   : > { %s2829_s14 = sld [smem:[#allocation21_spill]] }
 0x520   : > { %p1993_p6 = scmp.ge.s32.totalorder %s2827_s17, 2  ;;  %s1464_s12 = sand.u32 1, %s2828_s30  }
 0x521   : > { %p2830_p9 = scmp.ne.s32.totalorder %s2829_s14, 0  ;;  %s1465_s20 = scalar_lea.sflag [#allocation4], %s1464_s12 }
 0x523   : > { %p1980_p5 = pnand %p1993_p6, %p2830_p9 }
 0x525   : > { %2266 = dma.done.wait (!%p1980_p5), %s1465_s20, 2048  }
 0x526   : > { %2268 = vsyncadd (!%p1980_p5), %s1465_s20, 4294965248  ;;  %s2831_s20 = sld [smem:[#allocation19_spill]]  ;;  %s2832_s15 = sld [smem:[#allocation17_spill]] }
 0x527   : > { %s2833_s19 = sld [smem:[#allocation20_spill]]  ;;  %s2834_s17 = smov %s2275_s18 }
 0x52c   : > { %p24_p10 = scmp.ge.s32.totalorder %s2831_s20, 4   ;;  %s2835_s18 = smov %s2832_s15 }
 0x52e   :  { %26 = sbr.rel (!%p24_p10) target bundleno = 9 (0x9), region = 120 }
 0x535   :  { %1470 = vsyncpa [#allocation3], 1 }
 0x536   :  { %1472 = vsyncpa [#allocation3 + $0x1], 1 }
 0x537   :  { %1473 = vsyncpa [#allocation6], 1 }
 0x538   :  { %1474 = vsyncpa [#allocation9], 1 }
 0x539   :  { %1475 = vsyncpa [#allocation4], 1 }
 0x53a   :  { %1477 = vsyncpa [#allocation4 + $0x1], 1 }

</bundles_post_ra>
